<compile_context>
chip_gen: v6e
topology: v6e:2x2x1
jax: 0.10.0
libtpu: 0.0.40
codegen_flags: <defaults>
</compile_context>

<pallas_src>
import functools

import jax
import jax.numpy as jnp
from jax.experimental import pallas as pl
from jax.experimental.pallas import tpu as pltpu


# ----------------------------------------------------------------------------
# Pallas kernel:  o[p] = act( a[p] @ b[p] + bias )      (tiled over lanes of o)
# ----------------------------------------------------------------------------
def _matmul_bias_act_kernel(a_ref, b_ref, bias_ref, o_ref, *, act):
    # a_ref: (1, R, K) bf16    b_ref: (1, K, tl) bf16
    # bias_ref: (1, R, 1) or (1, 1, tl) f32      o_ref: (1, R, tl) f32
    y = jnp.dot(a_ref[0], b_ref[0], preferred_element_type=jnp.float32)
    y = y + bias_ref[0]
    if act == "relu":
        y = jnp.maximum(y, 0.0)
    elif act == "tanh":
        y = jnp.tanh(y)
    o_ref[0] = y.astype(o_ref.dtype)


def _pick_lane_tile(L, cap):
    """Full extent if it fits; else the largest 128-multiple divisor of L <= cap;
    else a 128-multiple (ragged last block is masked by Pallas)."""
    if L <= cap:
        return L
    for t in range(cap - cap % 128, 127, -128):
        if L % t == 0:
            return t
    return max(128, cap - cap % 128)


def matmul_bias_act(a, b, bias, act, *, bias_per_row, lane_tile_cap=2048):
    """a: (P, R, K), b: (P, K, L), bias: (1, R, 1) if bias_per_row else (1, 1, L).

    Returns act(a @ b + bias) as (P, R, L) float32.  L (the large N*H*W axis) is
    the lane axis, so stores are lane-dense and the MXU N-dimension is wide.
    """
    P, R, K = a.shape
    L = b.shape[2]
    tl = _pick_lane_tile(L, lane_tile_cap)
    grid = (P, pl.cdiv(L, tl))

    a = a.astype(jnp.bfloat16)
    b = b.astype(jnp.bfloat16)
    bias = bias.astype(jnp.float32)

    if bias_per_row:
        bias_spec = pl.BlockSpec((1, R, 1), lambda p, j: (0, 0, 0))
    else:
        bias_spec = pl.BlockSpec((1, 1, tl), lambda p, j: (0, 0, j))

    cost = pl.CostEstimate(
        flops=2 * P * R * K * L,
        transcendentals=(P * R * L) if act == "tanh" else 0,
        bytes_accessed=a.size * 2 + b.size * 2 + bias.size * 4 + P * R * L * 4,
    )

    kernel = functools.partial(_matmul_bias_act_kernel, act=act)
    return pl.pallas_call(
        kernel,
        out_shape=jax.ShapeDtypeStruct((P, R, L), jnp.float32),
        grid_spec=pltpu.PrefetchScalarGridSpec(
            num_scalar_prefetch=0,
            grid=grid,
            in_specs=[
                # weights: block index constant in j -> stay resident across lane tiles
                pl.BlockSpec((1, R, K), lambda p, j: (p, 0, 0)),
                pl.BlockSpec((1, K, tl), lambda p, j: (p, 0, j)),
                bias_spec,
            ],
            out_specs=pl.BlockSpec((1, R, tl), lambda p, j: (p, 0, j)),
        ),
        compiler_params=pltpu.CompilerParams(
            dimension_semantics=("parallel", "parallel"),
            vmem_limit_bytes=32 * 1024 * 1024,
        ),
        cost_estimate=cost,
    )(a, b, bias)


# ----------------------------------------------------------------------------
# Layer 1: ConvTranspose2d(nz, Cout, 4, stride=1, padding=0) on a 1x1 input
#   out[co, n, ky, kx] = sum_ci z[n, ci] * W[ci, co, ky, kx]
# computed as (N, nz) @ (nz, Cout*16) so the 16*Cout axis is the dense lane axis.
# ----------------------------------------------------------------------------
def conv_transpose_1x1_block(z_nk, w_t, scale, bias, act):
    N, nz = z_nk.shape
    cin, cout, kh, kw = w_t.shape
    wm = (w_t * scale[None, :, None, None]).reshape(cin, cout * kh * kw)
    bexp = jnp.repeat(bias, kh * kw).reshape(1, 1, cout * kh * kw)
    y = matmul_bias_act(z_nk.reshape(1, N, nz), wm.reshape(1, cin, cout * kh * kw),
                        bexp, act, bias_per_row=False)          # (1, N, Cout*16)
    y = y.reshape(N, cout, kh, kw)
    return jnp.transpose(y, (1, 0, 2, 3))                       # (Cout, N, 4, 4)


# ----------------------------------------------------------------------------
# Layers 2-5: ConvTranspose2d(k=4, stride=2, padding=1) + folded BN + activation
# via sub-pixel decomposition (4 parities, each a 2x2 conv of the 1-padded input).
# ----------------------------------------------------------------------------
def conv_transpose_s2_block(x_cnhw, w_t, scale, bias, act):
    """x_cnhw: (Cin, N, H, W) activations; w_t: (Cin, Cout, 4, 4) PyTorch weight.
    Returns (Cout, N, 2H, 2W) float32."""
    cin, N, H, W = x_cnhw.shape
    cout = w_t.shape[1]
    K = 4 * cin
    M = N * H * W

    xp = jnp.pad(x_cnhw, ((0, 0), (0, 0), (1, 1), (1, 1)))

    xs, ws = [], []
    for a in range(2):
        for b in range(2):
            # patches: K ordered as (r, c, ci); slices keep the lane axis intact
            slabs = [xp[:, :, a + r:a + r + H, b + c:b + c + W]
                     for r in range(2) for c in range(2)]
            xs.append(jnp.stack(slabs, axis=0).reshape(K, M))
            # matching 2x2 sub-kernel taps W[:, :, 3-a-2r, 3-b-2c], BN scale folded in
            wsub = w_t[:, :, [3 - a, 1 - a], :][:, :, :, [3 - b, 1 - b]]  # (ci,co,r,c)
            wmat = jnp.transpose(wsub, (1, 2, 3, 0)).reshape(cout, K)     # (co,(r,c,ci))
            ws.append(wmat * scale[:, None])
    xs = jnp.stack(xs, axis=0)                                   # (4, K, M)
    ws = jnp.stack(ws, axis=0)                                   # (4, Cout, K)

    y = matmul_bias_act(ws, xs, bias.reshape(1, cout, 1), act, bias_per_row=True)
    # pixel-shuffle the 4 parities back into (Cout, N, 2H, 2W)
    y = y.reshape(2, 2, cout, N, H, W)
    y = jnp.transpose(y, (2, 3, 4, 0, 5, 1)).reshape(cout, N, 2 * H, 2 * W)
    return y


# ----------------------------------------------------------------------------
# DCGAN_G parameters (deterministic synthetic init, DCGAN-style) and forward
# ----------------------------------------------------------------------------
def init_params(key, nz, ngf, nc):
    eps = 1e-5
    chans = [nz, ngf * 8, ngf * 4, ngf * 2, ngf, nc]
    params = []
    for li in range(5):
        cin, cout = chans[li], chans[li + 1]
        kw_, kbn = jax.random.split(jax.random.fold_in(key, li))
        w = 0.02 * jax.random.normal(kw_, (cin, cout, 4, 4), jnp.float32)
        if li < 4:  # BN layers follow the first four conv-transposes
            k1, k2, k3, k4 = jax.random.split(kbn, 4)
            gamma = 1.0 + 0.02 * jax.random.normal(k1, (cout,), jnp.float32)
            beta = 0.1 * jax.random.normal(k2, (cout,), jnp.float32)
            r_mean = 0.1 * jax.random.normal(k3, (cout,), jnp.float32)
            r_var = jnp.abs(1.0 + 0.1 * jax.random.normal(k4, (cout,), jnp.float32))
            scale = gamma / jnp.sqrt(r_var + eps)
            bias = beta - r_mean * scale
        else:       # final layer: no BN, Tanh only
            scale = jnp.ones((cout,), jnp.float32)
            bias = jnp.zeros((cout,), jnp.float32)
        params.append((w, scale, bias))
    return params


@jax.jit
def dcgan_g_forward(z, params):
    # z: (N, nz, 1, 1) NCHW (PyTorch convention)
    N, nz = z.shape[0], z.shape[1]
    w0, s0, b0 = params[0]
    x = conv_transpose_1x1_block(z.reshape(N, nz), w0, s0, b0, "relu")  # (ngf*8,N,4,4)
    for (w, s, b), a in zip(params[1:], ["relu", "relu", "relu", "tanh"]):
        x = conv_transpose_s2_block(x, w, s, b, a)
    return jnp.transpose(x, (1, 0, 2, 3))   # back to NCHW only at the public boundary


# ----------------------------------------------------------------------------
# Pure-JAX f32 reference (zero-dilate + flipped-kernel VALID conv) for validation
# ----------------------------------------------------------------------------
def _ref_conv_transpose(x, w, stride, padding):
    N, cin, H, W = x.shape
    k = w.shape[2]
    hu, wu = (H - 1) * stride + 1, (W - 1) * stride + 1
    xu = jnp.zeros((N, cin, hu, wu), x.dtype).at[:, :, ::stride, ::stride].set(x)
    p = k - 1 - padding
    xp = jnp.pad(xu, ((0, 0), (0, 0), (p, p), (p, p)))
    wf = jnp.transpose(w[:, :, ::-1, ::-1], (1, 0, 2, 3))   # (Cout, Cin, k, k) OIHW
    return jax.lax.conv_general_dilated(
        xp, wf, window_strides=(1, 1), padding="VALID",
        dimension_numbers=("NCHW", "OIHW", "NCHW"))


def dcgan_g_reference(z, params):
    strides = [1, 2, 2, 2, 2]
    paddings = [0, 1, 1, 1, 1]
    acts = ["relu", "relu", "relu", "relu", "tanh"]
    x = z
    for (w, s, b), st, p, a in zip(params, strides, paddings, acts):
        x = _ref_conv_transpose(x, w, st, p)
        x = x * s[None, :, None, None] + b[None, :, None, None]
        x = jnp.maximum(x, 0.0) if a == "relu" else jnp.tanh(x)
    return x


if __name__ == "__main__":
    key = jax.random.PRNGKey(0)
    nz, ngf, nc, batch = 8, 8, 3, 2

    params = init_params(key, nz, ngf, nc)
    z = jax.random.normal(jax.random.fold_in(key, 999), (batch, nz, 1, 1), jnp.float32)

    out = jax.block_until_ready(dcgan_g_forward(z, params))

    assert out.shape == (batch, nc, 64, 64), out.shape
    assert out.dtype == jnp.float32
    assert bool(jnp.all(jnp.isfinite(out)))
    assert bool(jnp.all(jnp.abs(out) <= 1.0 + 1e-6))  # tanh range

    # cross-check against the f32 reference (bf16 operands -> loose tolerance)
    ref = jax.block_until_ready(jax.jit(dcgan_g_reference)(z, params))
    assert bool(jnp.allclose(out, ref, rtol=1e-1, atol=5e-2)), \
        float(jnp.max(jnp.abs(out - ref)))

    print("KERNEL_OK")
</pallas_src>

<mosaic_0001>
module attributes {stable_mosaic.version = 11 : i64} {
  func.func @_matmul_bias_act_kernel(%arg0: i32, %arg1: i32, %arg2: memref<1x2x8xbf16, #tpu.memory_space<vmem>>, %arg3: memref<1x8x1024xbf16, #tpu.memory_space<vmem>>, %arg4: memref<1x1x1024xf32, #tpu.memory_space<vmem>>, %arg5: memref<1x2x1024xf32, #tpu.memory_space<vmem>>) attributes {dimension_semantics = [#tpu.dimension_semantics<parallel>, #tpu.dimension_semantics<parallel>], iteration_bounds = array<i64: 1, 1>, scalar_prefetch = 0 : i64, scratch_operands = 0 : i64, tpu.core_type = #tpu.core_type<tc>, window_params = [{transform_indices = @transform_0, window_bounds = array<i64: 1, 2, 8>}, {transform_indices = @transform_1, window_bounds = array<i64: 1, 8, 1024>}, {transform_indices = @transform_2, window_bounds = array<i64: 1, 1, 1024>}, {transform_indices = @transform_3, window_bounds = array<i64: 1, 2, 1024>}]} {
    %c0 = arith.constant 0 : index
    %c0_0 = arith.constant 0 : index
    %c0_1 = arith.constant 0 : index
    %0 = vector.load %arg2[%c0, %c0_0, %c0_1] : memref<1x2x8xbf16, #tpu.memory_space<vmem>>, vector<1x2x8xbf16>
    %1 = vector.shape_cast %0 : vector<1x2x8xbf16> to vector<2x8xbf16>
    %c0_2 = arith.constant 0 : index
    %c0_3 = arith.constant 0 : index
    %c0_4 = arith.constant 0 : index
    %2 = vector.load %arg3[%c0_2, %c0_3, %c0_4] : memref<1x8x1024xbf16, #tpu.memory_space<vmem>>, vector<1x8x1024xbf16>
    %3 = vector.shape_cast %2 : vector<1x8x1024xbf16> to vector<8x1024xbf16>
    %cst = arith.constant dense<0.000000e+00> : vector<2x1024xf32>
    %4 = tpu.matmul %1, %3, %cst {dimension_numbers = #tpu.dot_dimension_numbers<[1], [0], [0], [1], [0, 0, 1, 1], [], []>} : vector<2x8xbf16>, vector<8x1024xbf16>, vector<2x1024xf32> -> vector<2x1024xf32>
    %c0_5 = arith.constant 0 : index
    %c0_6 = arith.constant 0 : index
    %c0_7 = arith.constant 0 : index
    %5 = vector.load %arg4[%c0_5, %c0_6, %c0_7] : memref<1x1x1024xf32, #tpu.memory_space<vmem>>, vector<1x1x1024xf32>
    %6 = vector.shape_cast %5 : vector<1x1x1024xf32> to vector<1x1024xf32>
    %7 = vector.broadcast %6 : vector<1x1024xf32> to vector<2x1024xf32>
    %8 = arith.addf %4, %7 : vector<2x1024xf32>
    %cst_8 = arith.constant 0.000000e+00 : f32
    %9 = vector.broadcast %cst_8 : f32 to vector<2x1024xf32>
    %10 = arith.maximumf %8, %9 : vector<2x1024xf32>
    %c0_9 = arith.constant 0 : index
    %c0_10 = arith.constant 0 : index
    %c0_11 = arith.constant 0 : index
    %11 = vector.load %arg5[%c0_9, %c0_10, %c0_11] : memref<1x2x1024xf32, #tpu.memory_space<vmem>>, vector<1x2x1024xf32>
    %12 = vector.shape_cast %11 : vector<1x2x1024xf32> to vector<2x1024xf32>
    %13 = vector.shape_cast %10 : vector<2x1024xf32> to vector<1x2x1024xf32>
    tpu.vector_store %arg5[%c0_9, %c0_10, %c0_11], %13 {strides = array<i32>} : memref<1x2x1024xf32, #tpu.memory_space<vmem>>, vector<1x2x1024xf32>,
    return
  }
  func.func @transform_0(%arg0: i32, %arg1: i32) -> (i32, i32, i32) {
    %c0_i32 = arith.constant 0 : i32
    %c0_i32_0 = arith.constant 0 : i32
    %c0_i32_1 = arith.constant 0 : i32
    return %arg0, %c0_i32, %c0_i32_0 : i32, i32, i32
  }
  func.func @transform_1(%arg0: i32, %arg1: i32) -> (i32, i32, i32) {
    %c0_i32 = arith.constant 0 : i32
    %c0_i32_0 = arith.constant 0 : i32
    return %arg0, %c0_i32, %arg1 : i32, i32, i32
  }
  func.func @transform_2(%arg0: i32, %arg1: i32) -> (i32, i32, i32) {
    %c0_i32 = arith.constant 0 : i32
    %c0_i32_0 = arith.constant 0 : i32
    %c0_i32_1 = arith.constant 0 : i32
    return %c0_i32, %c0_i32_0, %arg1 : i32, i32, i32
  }
  func.func @transform_3(%arg0: i32, %arg1: i32) -> (i32, i32, i32) {
    %c0_i32 = arith.constant 0 : i32
    %c0_i32_0 = arith.constant 0 : i32
    return %arg0, %c0_i32, %arg1 : i32, i32, i32
  }
}

module attributes {stable_mosaic.version = 11 : i64} {
  func.func @_matmul_bias_act_kernel(%arg0: i32, %arg1: i32, %arg2: memref<1x32x256xbf16, #tpu.memory_space<vmem>>, %arg3: memref<1x256x32xbf16, #tpu.memory_space<vmem>>, %arg4: memref<1x32x1xf32, #tpu.memory_space<vmem>>, %arg5: memref<1x32x32xf32, #tpu.memory_space<vmem>>) attributes {dimension_semantics = [#tpu.dimension_semantics<parallel>, #tpu.dimension_semantics<parallel>], iteration_bounds = array<i64: 4, 1>, scalar_prefetch = 0 : i64, scratch_operands = 0 : i64, tpu.core_type = #tpu.core_type<tc>, window_params = [{transform_indices = @transform_0, window_bounds = array<i64: 1, 32, 256>}, {transform_indices = @transform_1, window_bounds = array<i64: 1, 256, 32>}, {pipeline_mode = #tpu.pipeline_mode<synchronous>, transform_indices = @transform_2, window_bounds = array<i64: 1, 32, 1>}, {transform_indices = @transform_3, window_bounds = array<i64: 1, 32, 32>}]} {
    %c0 = arith.constant 0 : index
    %c0_0 = arith.constant 0 : index
    %c0_1 = arith.constant 0 : index
    %0 = vector.load %arg2[%c0, %c0_0, %c0_1] : memref<1x32x256xbf16, #tpu.memory_space<vmem>>, vector<1x32x256xbf16>
    %1 = vector.shape_cast %0 : vector<1x32x256xbf16> to vector<32x256xbf16>
    %c0_2 = arith.constant 0 : index
    %c0_3 = arith.constant 0 : index
    %c0_4 = arith.constant 0 : index
    %2 = vector.load %arg3[%c0_2, %c0_3, %c0_4] : memref<1x256x32xbf16, #tpu.memory_space<vmem>>, vector<1x256x32xbf16>
    %3 = vector.shape_cast %2 : vector<1x256x32xbf16> to vector<256x32xbf16>
    %cst = arith.constant dense<0.000000e+00> : vector<32x32xf32>
    %4 = tpu.matmul %1, %3, %cst {dimension_numbers = #tpu.dot_dimension_numbers<[1], [0], [0], [1], [0, 0, 1, 1], [], []>} : vector<32x256xbf16>, vector<256x32xbf16>, vector<32x32xf32> -> vector<32x32xf32>
    %c0_5 = arith.constant 0 : index
    %c0_6 = arith.constant 0 : index
    %c0_7 = arith.constant 0 : index
    %5 = vector.load %arg4[%c0_5, %c0_6, %c0_7] : memref<1x32x1xf32, #tpu.memory_space<vmem>>, vector<1x32x1xf32>
    %6 = vector.shape_cast %5 : vector<1x32x1xf32> to vector<32x1xf32>
    %7 = vector.broadcast %6 : vector<32x1xf32> to vector<32x32xf32>
    %8 = arith.addf %4, %7 : vector<32x32xf32>
    %cst_8 = arith.constant 0.000000e+00 : f32
    %9 = vector.broadcast %cst_8 : f32 to vector<32x32xf32>
    %10 = arith.maximumf %8, %9 : vector<32x32xf32>
    %c0_9 = arith.constant 0 : index
    %c0_10 = arith.constant 0 : index
    %c0_11 = arith.constant 0 : index
    %11 = vector.load %arg5[%c0_9, %c0_10, %c0_11] : memref<1x32x32xf32, #tpu.memory_space<vmem>>, vector<1x32x32xf32>
    %12 = vector.shape_cast %11 : vector<1x32x32xf32> to vector<32x32xf32>
    %13 = vector.shape_cast %10 : vector<32x32xf32> to vector<1x32x32xf32>
    tpu.vector_store %arg5[%c0_9, %c0_10, %c0_11], %13 {strides = array<i32>} : memref<1x32x32xf32, #tpu.memory_space<vmem>>, vector<1x32x32xf32>,
    return
  }
  func.func @transform_0(%arg0: i32, %arg1: i32) -> (i32, i32, i32) {
    %c0_i32 = arith.constant 0 : i32
    %c0_i32_0 = arith.constant 0 : i32
    %c0_i32_1 = arith.constant 0 : i32
    return %arg0, %c0_i32, %c0_i32_0 : i32, i32, i32
  }
  func.func @transform_1(%arg0: i32, %arg1: i32) -> (i32, i32, i32) {
    %c0_i32 = arith.constant 0 : i32
    %c0_i32_0 = arith.constant 0 : i32
    return %arg0, %c0_i32, %arg1 : i32, i32, i32
  }
  func.func @transform_2(%arg0: i32, %arg1: i32) -> (i32, i32, i32) {
    %c0_i32 = arith.constant 0 : i32
    %c0_i32_0 = arith.constant 0 : i32
    %c0_i32_1 = arith.constant 0 : i32
    %c0_i32_2 = arith.constant 0 : i32
    return %c0_i32, %c0_i32_0, %c0_i32_1 : i32, i32, i32
  }
  func.func @transform_3(%arg0: i32, %arg1: i32) -> (i32, i32, i32) {
    %c0_i32 = arith.constant 0 : i32
    %c0_i32_0 = arith.constant 0 : i32
    return %arg0, %c0_i32, %arg1 : i32, i32, i32
  }
}

module attributes {stable_mosaic.version = 11 : i64} {
  func.func @_matmul_bias_act_kernel(%arg0: i32, %arg1: i32, %arg2: memref<1x16x128xbf16, #tpu.memory_space<vmem>>, %arg3: memref<1x128x128xbf16, #tpu.memory_space<vmem>>, %arg4: memref<1x16x1xf32, #tpu.memory_space<vmem>>, %arg5: memref<1x16x128xf32, #tpu.memory_space<vmem>>) attributes {dimension_semantics = [#tpu.dimension_semantics<parallel>, #tpu.dimension_semantics<parallel>], iteration_bounds = array<i64: 4, 1>, scalar_prefetch = 0 : i64, scratch_operands = 0 : i64, tpu.core_type = #tpu.core_type<tc>, window_params = [{transform_indices = @transform_0, window_bounds = array<i64: 1, 16, 128>}, {transform_indices = @transform_1, window_bounds = array<i64: 1, 128, 128>}, {pipeline_mode = #tpu.pipeline_mode<synchronous>, transform_indices = @transform_2, window_bounds = array<i64: 1, 16, 1>}, {transform_indices = @transform_3, window_bounds = array<i64: 1, 16, 128>}]} {
    %c0 = arith.constant 0 : index
    %c0_0 = arith.constant 0 : index
    %c0_1 = arith.constant 0 : index
    %0 = vector.load %arg2[%c0, %c0_0, %c0_1] : memref<1x16x128xbf16, #tpu.memory_space<vmem>>, vector<1x16x128xbf16>
    %1 = vector.shape_cast %0 : vector<1x16x128xbf16> to vector<16x128xbf16>
    %c0_2 = arith.constant 0 : index
    %c0_3 = arith.constant 0 : index
    %c0_4 = arith.constant 0 : index
    %2 = vector.load %arg3[%c0_2, %c0_3, %c0_4] : memref<1x128x128xbf16, #tpu.memory_space<vmem>>, vector<1x128x128xbf16>
    %3 = vector.shape_cast %2 : vector<1x128x128xbf16> to vector<128x128xbf16>
    %cst = arith.constant dense<0.000000e+00> : vector<16x128xf32>
    %4 = tpu.matmul %1, %3, %cst {dimension_numbers = #tpu.dot_dimension_numbers<[1], [0], [0], [1], [0, 0, 1, 1], [], []>} : vector<16x128xbf16>, vector<128x128xbf16>, vector<16x128xf32> -> vector<16x128xf32>
    %c0_5 = arith.constant 0 : index
    %c0_6 = arith.constant 0 : index
    %c0_7 = arith.constant 0 : index
    %5 = vector.load %arg4[%c0_5, %c0_6, %c0_7] : memref<1x16x1xf32, #tpu.memory_space<vmem>>, vector<1x16x1xf32>
    %6 = vector.shape_cast %5 : vector<1x16x1xf32> to vector<16x1xf32>
    %7 = vector.broadcast %6 : vector<16x1xf32> to vector<16x128xf32>
    %8 = arith.addf %4, %7 : vector<16x128xf32>
    %cst_8 = arith.constant 0.000000e+00 : f32
    %9 = vector.broadcast %cst_8 : f32 to vector<16x128xf32>
    %10 = arith.maximumf %8, %9 : vector<16x128xf32>
    %c0_9 = arith.constant 0 : index
    %c0_10 = arith.constant 0 : index
    %c0_11 = arith.constant 0 : index
    %11 = vector.load %arg5[%c0_9, %c0_10, %c0_11] : memref<1x16x128xf32, #tpu.memory_space<vmem>>, vector<1x16x128xf32>
    %12 = vector.shape_cast %11 : vector<1x16x128xf32> to vector<16x128xf32>
    %13 = vector.shape_cast %10 : vector<16x128xf32> to vector<1x16x128xf32>
    tpu.vector_store %arg5[%c0_9, %c0_10, %c0_11], %13 {strides = array<i32>} : memref<1x16x128xf32, #tpu.memory_space<vmem>>, vector<1x16x128xf32>,
    return
  }
  func.func @transform_0(%arg0: i32, %arg1: i32) -> (i32, i32, i32) {
    %c0_i32 = arith.constant 0 : i32
    %c0_i32_0 = arith.constant 0 : i32
    %c0_i32_1 = arith.constant 0 : i32
    return %arg0, %c0_i32, %c0_i32_0 : i32, i32, i32
  }
  func.func @transform_1(%arg0: i32, %arg1: i32) -> (i32, i32, i32) {
    %c0_i32 = arith.constant 0 : i32
    %c0_i32_0 = arith.constant 0 : i32
    return %arg0, %c0_i32, %arg1 : i32, i32, i32
  }
  func.func @transform_2(%arg0: i32, %arg1: i32) -> (i32, i32, i32) {
    %c0_i32 = arith.constant 0 : i32
    %c0_i32_0 = arith.constant 0 : i32
    %c0_i32_1 = arith.constant 0 : i32
    %c0_i32_2 = arith.constant 0 : i32
    return %c0_i32, %c0_i32_0, %c0_i32_1 : i32, i32, i32
  }
  func.func @transform_3(%arg0: i32, %arg1: i32) -> (i32, i32, i32) {
    %c0_i32 = arith.constant 0 : i32
    %c0_i32_0 = arith.constant 0 : i32
    return %arg0, %c0_i32, %arg1 : i32, i32, i32
  }
}

module attributes {stable_mosaic.version = 11 : i64} {
  func.func @_matmul_bias_act_kernel(%arg0: i32, %arg1: i32, %arg2: memref<1x8x64xbf16, #tpu.memory_space<vmem>>, %arg3: memref<1x64x512xbf16, #tpu.memory_space<vmem>>, %arg4: memref<1x8x1xf32, #tpu.memory_space<vmem>>, %arg5: memref<1x8x512xf32, #tpu.memory_space<vmem>>) attributes {dimension_semantics = [#tpu.dimension_semantics<parallel>, #tpu.dimension_semantics<parallel>], iteration_bounds = array<i64: 4, 1>, scalar_prefetch = 0 : i64, scratch_operands = 0 : i64, tpu.core_type = #tpu.core_type<tc>, window_params = [{transform_indices = @transform_0, window_bounds = array<i64: 1, 8, 64>}, {transform_indices = @transform_1, window_bounds = array<i64: 1, 64, 512>}, {pipeline_mode = #tpu.pipeline_mode<synchronous>, transform_indices = @transform_2, window_bounds = array<i64: 1, 8, 1>}, {transform_indices = @transform_3, window_bounds = array<i64: 1, 8, 512>}]} {
    %c0 = arith.constant 0 : index
    %c0_0 = arith.constant 0 : index
    %c0_1 = arith.constant 0 : index
    %0 = vector.load %arg2[%c0, %c0_0, %c0_1] : memref<1x8x64xbf16, #tpu.memory_space<vmem>>, vector<1x8x64xbf16>
    %1 = vector.shape_cast %0 : vector<1x8x64xbf16> to vector<8x64xbf16>
    %c0_2 = arith.constant 0 : index
    %c0_3 = arith.constant 0 : index
    %c0_4 = arith.constant 0 : index
    %2 = vector.load %arg3[%c0_2, %c0_3, %c0_4] : memref<1x64x512xbf16, #tpu.memory_space<vmem>>, vector<1x64x512xbf16>
    %3 = vector.shape_cast %2 : vector<1x64x512xbf16> to vector<64x512xbf16>
    %cst = arith.constant dense<0.000000e+00> : vector<8x512xf32>
    %4 = tpu.matmul %1, %3, %cst {dimension_numbers = #tpu.dot_dimension_numbers<[1], [0], [0], [1], [0, 0, 1, 1], [], []>} : vector<8x64xbf16>, vector<64x512xbf16>, vector<8x512xf32> -> vector<8x512xf32>
    %c0_5 = arith.constant 0 : index
    %c0_6 = arith.constant 0 : index
    %c0_7 = arith.constant 0 : index
    %5 = vector.load %arg4[%c0_5, %c0_6, %c0_7] : memref<1x8x1xf32, #tpu.memory_space<vmem>>, vector<1x8x1xf32>
    %6 = vector.shape_cast %5 : vector<1x8x1xf32> to vector<8x1xf32>
    %7 = vector.broadcast %6 : vector<8x1xf32> to vector<8x512xf32>
    %8 = arith.addf %4, %7 : vector<8x512xf32>
    %cst_8 = arith.constant 0.000000e+00 : f32
    %9 = vector.broadcast %cst_8 : f32 to vector<8x512xf32>
    %10 = arith.maximumf %8, %9 : vector<8x512xf32>
    %c0_9 = arith.constant 0 : index
    %c0_10 = arith.constant 0 : index
    %c0_11 = arith.constant 0 : index
    %11 = vector.load %arg5[%c0_9, %c0_10, %c0_11] : memref<1x8x512xf32, #tpu.memory_space<vmem>>, vector<1x8x512xf32>
    %12 = vector.shape_cast %11 : vector<1x8x512xf32> to vector<8x512xf32>
    %13 = vector.shape_cast %10 : vector<8x512xf32> to vector<1x8x512xf32>
    tpu.vector_store %arg5[%c0_9, %c0_10, %c0_11], %13 {strides = array<i32>} : memref<1x8x512xf32, #tpu.memory_space<vmem>>, vector<1x8x512xf32>,
    return
  }
  func.func @transform_0(%arg0: i32, %arg1: i32) -> (i32, i32, i32) {
    %c0_i32 = arith.constant 0 : i32
    %c0_i32_0 = arith.constant 0 : i32
    %c0_i32_1 = arith.constant 0 : i32
    return %arg0, %c0_i32, %c0_i32_0 : i32, i32, i32
  }
  func.func @transform_1(%arg0: i32, %arg1: i32) -> (i32, i32, i32) {
    %c0_i32 = arith.constant 0 : i32
    %c0_i32_0 = arith.constant 0 : i32
    return %arg0, %c0_i32, %arg1 : i32, i32, i32
  }
  func.func @transform_2(%arg0: i32, %arg1: i32) -> (i32, i32, i32) {
    %c0_i32 = arith.constant 0 : i32
    %c0_i32_0 = arith.constant 0 : i32
    %c0_i32_1 = arith.constant 0 : i32
    %c0_i32_2 = arith.constant 0 : i32
    return %c0_i32, %c0_i32_0, %c0_i32_1 : i32, i32, i32
  }
  func.func @transform_3(%arg0: i32, %arg1: i32) -> (i32, i32, i32) {
    %c0_i32 = arith.constant 0 : i32
    %c0_i32_0 = arith.constant 0 : i32
    return %arg0, %c0_i32, %arg1 : i32, i32, i32
  }
}

module attributes {stable_mosaic.version = 11 : i64} {
  func.func @_matmul_bias_act_kernel(%arg0: i32, %arg1: i32, %arg2: memref<1x3x32xbf16, #tpu.memory_space<vmem>>, %arg3: memref<1x32x2048xbf16, #tpu.memory_space<vmem>>, %arg4: memref<1x3x1xf32, #tpu.memory_space<vmem>>, %arg5: memref<1x3x2048xf32, #tpu.memory_space<vmem>>) attributes {dimension_semantics = [#tpu.dimension_semantics<parallel>, #tpu.dimension_semantics<parallel>], iteration_bounds = array<i64: 4, 1>, scalar_prefetch = 0 : i64, scratch_operands = 0 : i64, tpu.core_type = #tpu.core_type<tc>, window_params = [{transform_indices = @transform_0, window_bounds = array<i64: 1, 3, 32>}, {transform_indices = @transform_1, window_bounds = array<i64: 1, 32, 2048>}, {pipeline_mode = #tpu.pipeline_mode<synchronous>, transform_indices = @transform_2, window_bounds = array<i64: 1, 3, 1>}, {transform_indices = @transform_3, window_bounds = array<i64: 1, 3, 2048>}]} {
    %c0 = arith.constant 0 : index
    %c0_0 = arith.constant 0 : index
    %c0_1 = arith.constant 0 : index
    %0 = vector.load %arg2[%c0, %c0_0, %c0_1] : memref<1x3x32xbf16, #tpu.memory_space<vmem>>, vector<1x3x32xbf16>
    %1 = vector.shape_cast %0 : vector<1x3x32xbf16> to vector<3x32xbf16>
    %c0_2 = arith.constant 0 : index
    %c0_3 = arith.constant 0 : index
    %c0_4 = arith.constant 0 : index
    %2 = vector.load %arg3[%c0_2, %c0_3, %c0_4] : memref<1x32x2048xbf16, #tpu.memory_space<vmem>>, vector<1x32x2048xbf16>
    %3 = vector.shape_cast %2 : vector<1x32x2048xbf16> to vector<32x2048xbf16>
    %cst = arith.constant dense<0.000000e+00> : vector<3x2048xf32>
    %4 = tpu.matmul %1, %3, %cst {dimension_numbers = #tpu.dot_dimension_numbers<[1], [0], [0], [1], [0, 0, 1, 1], [], []>} : vector<3x32xbf16>, vector<32x2048xbf16>, vector<3x2048xf32> -> vector<3x2048xf32>
    %c0_5 = arith.constant 0 : index
    %c0_6 = arith.constant 0 : index
    %c0_7 = arith.constant 0 : index
    %5 = vector.load %arg4[%c0_5, %c0_6, %c0_7] : memref<1x3x1xf32, #tpu.memory_space<vmem>>, vector<1x3x1xf32>
    %6 = vector.shape_cast %5 : vector<1x3x1xf32> to vector<3x1xf32>
    %7 = vector.broadcast %6 : vector<3x1xf32> to vector<3x2048xf32>
    %8 = arith.addf %4, %7 : vector<3x2048xf32>
    %9 = math.tanh %8 : vector<3x2048xf32>
    %c0_8 = arith.constant 0 : index
    %c0_9 = arith.constant 0 : index
    %c0_10 = arith.constant 0 : index
    %10 = vector.load %arg5[%c0_8, %c0_9, %c0_10] : memref<1x3x2048xf32, #tpu.memory_space<vmem>>, vector<1x3x2048xf32>
    %11 = vector.shape_cast %10 : vector<1x3x2048xf32> to vector<3x2048xf32>
    %12 = vector.shape_cast %9 : vector<3x2048xf32> to vector<1x3x2048xf32>
    tpu.vector_store %arg5[%c0_8, %c0_9, %c0_10], %12 {strides = array<i32>} : memref<1x3x2048xf32, #tpu.memory_space<vmem>>, vector<1x3x2048xf32>,
    return
  }
  func.func @transform_0(%arg0: i32, %arg1: i32) -> (i32, i32, i32) {
    %c0_i32 = arith.constant 0 : i32
    %c0_i32_0 = arith.constant 0 : i32
    %c0_i32_1 = arith.constant 0 : i32
    return %arg0, %c0_i32, %c0_i32_0 : i32, i32, i32
  }
  func.func @transform_1(%arg0: i32, %arg1: i32) -> (i32, i32, i32) {
    %c0_i32 = arith.constant 0 : i32
    %c0_i32_0 = arith.constant 0 : i32
    return %arg0, %c0_i32, %arg1 : i32, i32, i32
  }
  func.func @transform_2(%arg0: i32, %arg1: i32) -> (i32, i32, i32) {
    %c0_i32 = arith.constant 0 : i32
    %c0_i32_0 = arith.constant 0 : i32
    %c0_i32_1 = arith.constant 0 : i32
    %c0_i32_2 = arith.constant 0 : i32
    return %c0_i32, %c0_i32_0, %c0_i32_1 : i32, i32, i32
  }
  func.func @transform_3(%arg0: i32, %arg1: i32) -> (i32, i32, i32) {
    %c0_i32 = arith.constant 0 : i32
    %c0_i32_0 = arith.constant 0 : i32
    return %arg0, %c0_i32, %arg1 : i32, i32, i32
  }
}

</mosaic_0001>

<bundles_post_ra>
// kernel: dcgan_g_forward.5
= control target key start
LH: loop header
LB: loop body
LE: loop exit
PB: predicated region body
PF: predicated region fallthrough
CT: control target
= control target key end

     0   :  { %vm86_vm0 = vcmask 1043456   ;;  %v359_v2 = vmov 0   ;;  %vm82_vm1 = vcmask 64512   ;;  %v22_v18 = vlaneseq  ;;  %s413_s1 = inlined_call_operand.vmem [shape: bf16[1,8,1024], index: 1, kind: input, shape index: {}]   ;;  %s414_s0 = inlined_call_operand.vmem [shape: bf16[1,2,8], index: 0, kind: input, shape index: {}]   ;;  %s415_s2 = inlined_call_operand.vmem [shape: f32[1,1,1024], index: 2, kind: input, shape index: {}]   ;;  %s416_s3 = inlined_call_operand.vmem [shape: f32[1,2,1024], index: 3, kind: output, shape index: {}]  }
   0x1   :  { %v16_v0 = vld [vmem:[%s413_s1] sm:$0xff]  ;;  %v17_v1 = vld [vmem:[%s413_s1 + $0x8] sm:$0xff]  ;;  %143 = vmatprep.mubr.bf16.mxu0 %v359_v2  ;;  %184 = vmatprep.mubr.bf16.mxu1 %v359_v2  ;;  %v18_v7 = vld [vmem:[%s413_s1 + $0x10] sm:$0xff]  ;;  %v360_v25 = vmov 1983009808  }
   0x2   :  { %v334_v3 = vcombine.high %v16_v0, %v16_v0  ;;  %v336_v4 = vcombine.high %v17_v1, %v17_v1  ;;  %v333_v5 = vcombine.low %v16_v0, %v16_v0  ;;  %v335_v6 = vcombine.low %v17_v1, %v17_v1  ;;  %v19_v8 = vld [vmem:[%s413_s1 + $0x18] sm:$0xff]  ;;  %v15_v15 = vld [vmem:[%s414_s0] sm:$0x1] }
   0x3   :  { %v338_v9 = vcombine.high %v18_v7, %v18_v7  ;;  %v340_v10 = vcombine.high %v19_v8, %v19_v8  ;;  %v337_v11 = vcombine.low %v18_v7, %v18_v7  ;;  %v339_v12 = vcombine.low %v19_v8, %v19_v8  ;;  %v20_v22 = vld [vmem:[%s415_s2] sm:$0xff] }
   0x4   :  { %341 = vmatprep.subr.msk.bf16.mxu0 %vm86_vm0, %v334_v3  ;;  %343 = vmatprep.subr.msk.bf16.mxu1 %vm86_vm0, %v336_v4  ;;  %v88_v13 = vsel %vm86_vm0, %v333_v5, 0  ;;  %v94_v14 = vsel %vm86_vm0, %v335_v6, 0  ;;  %v23_v19 = vshrl.u32 %v22_v18, 7  ;;  %v294_v26 = vunpack.c.l.s4 %v360_v25 }
   0x5   :  { %126 = vmatpush1.bf16.msra.mxu0 %v88_v13  ;;  %167 = vmatpush1.bf16.msra.mxu1 %v94_v14  ;;  %v100_v16 = vsel %vm86_vm0, %v337_v11, 0  ;;  %v106_v17 = vsel %vm86_vm0, %v339_v12, 0 }
   0x6   :  { %345 = vmatprep.subr.msk.bf16.mxu0 %vm86_vm0, %v338_v9  ;;  %347 = vmatprep.subr.msk.bf16.mxu1 %vm86_vm0, %v340_v10  ;;  %v24_v20 = vsub.s32 0, %v23_v19  ;;  %v32_v21 = vsub.s32 2, %v23_v19  ;;  %v28_v23 = vsub.s32 1, %v23_v19  ;;  %v36_v24 = vsub.s32 3, %v23_v19 }
   0x7   :  { %v295_v33 = vunpack.c.0.s8 %v294_v26  ;;  %v40_v34 = vsub.s32 4, %v23_v19  ;;  %v48_v39 = vsub.s32 6, %v23_v19  ;;  %v44_v42 = vsub.s32 5, %v23_v19 }
   0x8   :  { %342 = vmatmul.mubr.msk.bf16.vlgmr.msra.gmra.mxu0 %vm82_vm1, %v15_v15  ;;  %344 = vmatmul.mubr.msk.bf16.vlgmr.msra.gmra.mxu1 %vm82_vm1, %v15_v15  ;;  %v25_v27 = vrot.slane %v20_v22, %v24_v20  ;;  %v33_v28 = vrot.slane %v20_v22, %v32_v21  ;;  %v29_v29 = vrot.slane %v20_v22, %v28_v23  ;;  %v52_v47 = vsub.s32 7, %v23_v19 }
   0x9   :  { %208 = vmatpush1.bf16.msra.mxu0 %v100_v16  ;;  %249 = vmatpush1.bf16.msra.mxu1 %v106_v17  ;;  %v37_v30 = vrot.slane %v20_v22, %v36_v24  ;;  %v298_v43 = vsub.s32 %v295_v33, %v23_v19  ;;  %v41_v46 = vrot.slane %v20_v22, %v40_v34 }
   0xa   :  { %225 = vmatprep.mubr.bf16.mxu0 %v359_v2  ;;  %266 = vmatprep.mubr.bf16.mxu1 %v359_v2  ;;  %v49_v54 = vrot.slane %v20_v22, %v48_v39  ;;  %v45_v57 = vrot.slane %v20_v22, %v44_v42  ;;  %v53_v60 = vrot.slane %v20_v22, %v52_v47 }
  0x10   :  { %346 = vmatmul.mubr.msk.bf16.vlgmr.msra.gmra.mxu0 %vm82_vm1, %v15_v15  ;;  %348 = vmatmul.mubr.msk.bf16.vlgmr.msra.gmra.mxu1 %vm82_vm1, %v15_v15 }
  0xc8   :  { %v145_v31 = vpop.f32.mrf.mxu0  ;;  %v186_v32 = vpop.f32.mrf.mxu1 }
  0xc9   :  { %v146_v35 = vadd.f32 %v145_v31, %v25_v27  ;;  %v187_v36 = vadd.f32 %v186_v32, %v33_v28 }
  0xca   :  { %v147_v37 = vpop.f32.mrf.mxu0  ;;  %v188_v38 = vpop.f32.mrf.mxu1 }
  0xcb   :  { %v148_v40 = vadd.f32 %v147_v37, %v29_v29  ;;  %v189_v41 = vadd.f32 %v188_v38, %v37_v30  ;;  %v275_v48 = vmax.f32 %v146_v35, 0.0  ;;  %v277_v49 = vmax.f32 %v187_v36, 0.0 }
  0xcc   :  { %v149_v44 = vpop.f32.mrf.mxu0  ;;  %v190_v45 = vpop.f32.mrf.mxu1 }
  0xcd   :  { %v276_v50 = vmax.f32 %v148_v40, 0.0  ;;  %v278_v51 = vmax.f32 %v189_v41, 0.0 }
  0xce   :  { %v150_v52 = vpop.f32.mrf.mxu0  ;;  %v191_v53 = vpop.f32.mrf.mxu1 }
  0xcf   :  { %v291_v55 = vcombine.low %v275_v48, %v276_v50  ;;  %v292_v56 = vcombine.low %v277_v49, %v278_v51 }
  0xd0   :  { %v227_v58 = vpop.f32.mrf.mxu0  ;;  %v268_v59 = vpop.f32.mrf.mxu1 }
  0xd1   :  { %v299_v61 = vrot.slane %v291_v55, %v298_v43  ;;  %v306_v62 = vrot.slane %v292_v56, %v298_v43  ;;  %v228_v63 = vadd.f32 %v227_v58, %v41_v46  ;;  %v269_v0 = vadd.f32 %v268_v59, %v49_v54 }
  0xd2   :  { %v229_v1 = vpop.f32.mrf.mxu0  ;;  %v270_v2 = vpop.f32.mrf.mxu1 }
  0xd3   :  { %v307_v3 = vcombine.low %v299_v61, %v306_v62  ;;  %v230_v4 = vadd.f32 %v229_v1, %v45_v57  ;;  %v271_v5 = vadd.f32 %v270_v2, %v53_v60  ;;  %v279_v8 = vmax.f32 %v228_v63, 0.0 }
  0xd4   :  { %v231_v6 = vpop.f32.mrf.mxu0  ;;  %v272_v7 = vpop.f32.mrf.mxu1  ;;  %v281_v10 = vmax.f32 %v269_v0, 0.0 }
  0xd5   :  { %327 = vst [vmem:[%s416_s3] sm:$0xff] %v307_v3  ;;  %v280_v9 = vmax.f32 %v230_v4, 0.0  ;;  %v282_v11 = vmax.f32 %v271_v5, 0.0 }
  0xd6   :  { %v232_v12 = vpop.f32.mrf.mxu0  ;;  %v273_v13 = vpop.f32.mrf.mxu1 }
  0xd7   :  { %v308_v14 = vcombine.low %v279_v8, %v280_v9  ;;  %v309_v15 = vcombine.low %v281_v10, %v282_v11 }
  0xd9   :  { %v316_v16 = vrot.slane %v308_v14, %v298_v43  ;;  %v323_v17 = vrot.slane %v309_v15, %v298_v43 }
  0xdb   :  { %v324_v18 = vcombine.low %v316_v16, %v323_v17 }
  0xdd   :  { %328 = vst [vmem:[%s416_s3 + $0x8] sm:$0xff] %v324_v18 }

// kernel: dcgan_g_forward.6
= control target key start
LH: loop header
LB: loop body
LE: loop exit
PB: predicated region body
PF: predicated region fallthrough
CT: control target
= control target key end

     0   :  { %s726_s12 = smov 0   ;;  %s728_s13 = smov 0   ;;  %s804_s0 = inlined_call_operand.vmem [shape: bf16[4,32,256], index: 0, kind: input, shape index: {}]   ;;  %s805_s1 = inlined_call_operand.vmem [shape: bf16[4,256,32], index: 1, kind: input, shape index: {}]   ;;  %s806_s2 = inlined_call_operand.vmem [shape: f32[1,32,1], index: 2, kind: input, shape index: {}]   ;;  %s807_s3 = inlined_call_operand.vmem [shape: f32[4,32,32], index: 3, kind: output, shape index: {}]  }
   0x1   :  { %s730_s14 = smov 0  }
   0x2 LB: > { %s25_s15 = sadd.s32 1, %s699_s13  ;;  %p556_p0 = scmp.ge.s32.totalorder %s703_s14, 1  ;;  %s703_s14 = sphi %s730_s14, %s13_s14   ;;  %s699_s13 = sphi %s728_s13, %s809_s13   ;;  %s695_s12 = sphi %s726_s12, %s808_s12  }
   0x3   : > { %p27_p1 = scmp.ge.s32.totalorder %s25_s15, 4  ;;  %p166_p2 = scmp.lt.s32.totalorder %s703_s14, 5 }
   0x5   : > { %s811_s15 = smov (%p27_p1, %s25_s15), 0  ;;  %p167_p3 = pnand %p556_p0, %p166_p2 }
   0x6   : > { %p201_p4 = scmp.lt.s32.totalorder (!%p167_p3), %s695_s12, 3 }
   0x7   : > { %170 = sbr.rel (%p167_p3) target bundleno = 254 (0xfe), region = 32 }
   0xc   : > { %v261_v0 = vld [vmem:[%s806_s2 + $0x10] sm:$0xff]  ;;  %v259_v1 = vld [vmem:[%s806_s2] sm:$0xff]  ;;  %v705_v2 = vmov 0   ;;  %s813_s12 = smov (!%p201_p4, %s695_s12), 3  ;;  %v262_v3 = vld [vmem:[%s806_s2 + $0x18] sm:$0xff]  ;;  %vm452_vm0 = vcmask 261120  }
   0xd   : > { %658 = vset.pattern.permute.xlu1 %v705_v2  ;;  %657 = vset.pattern.permute.xlu0 %v705_v2  ;;  %v260_v4 = vld [vmem:[%s806_s2 + $0x8] sm:$0xff]  ;;  %s586_s24 = sshll.u32 %s813_s12, 7  ;;  %s585_s28 = sshll.u32 %s813_s12, 5 }
   0xe   : > { %275 = vperm.xlu1 %658, %v261_v0   ;;  %265 = vperm.xlu0 %657, %v259_v1   ;;  %s762_s27 = scalar_lea.vmem %s805_s1, %s586_s24  ;;  %s205_s4 = scalar_lea.vmem %s804_s0, %s585_s28 }
   0xf   : > { %v659_v5 = vld [vmem:[%s762_s27 + $0x78] sm:$0xff]   ;;  %v661_v7 = vld [vmem:[%s762_s27 + $0x70] sm:$0xff]   ;;  %v663_v9 = vld [vmem:[%s762_s27 + $0x68] sm:$0xff]   ;;  %s221_s7 = scalar_lea.vmem %s807_s3, %s585_s28 }
  0x10   : > { %v660_v6 = vld [vmem:[%s762_s27 + $0x38] sm:$0xff]   ;;  %588 = vmatprep.subr.bf16.mxu0 %v659_v5  ;;  %616 = vmatprep.subr.bf16.mxu1 %v659_v5  ;;  %v662_v8 = vld [vmem:[%s762_s27 + $0x30] sm:$0xff]   ;;  %v664_v10 = vld [vmem:[%s762_s27 + $0x28] sm:$0xff]  }
  0x11   : > { %589 = vmatpush3.bf16.msra.mxu0 %v660_v6  ;;  %624 = vmatpush3.bf16.msra.mxu1 %v660_v6  ;;  %v665_v11 = vld [vmem:[%s762_s27 + $0x60] sm:$0xff]   ;;  %v667_v13 = vld [vmem:[%s762_s27 + $0x58] sm:$0xff]   ;;  %v669_v15 = vld [vmem:[%s762_s27 + $0x50] sm:$0xff]  }
  0x12   : > { %280 = vperm.xlu1 %658, %v262_v3   ;;  %270 = vperm.xlu0 %657, %v260_v4   ;;  %v666_v12 = vld [vmem:[%s762_s27 + $0x20] sm:$0xff]   ;;  %v668_v14 = vld [vmem:[%s762_s27 + $0x18] sm:$0xff]   ;;  %v670_v18 = vld [vmem:[%s762_s27 + $0x10] sm:$0xff]  }
  0x13   : > { %590 = vmatprep.subr.bf16.mxu0 %v661_v7  ;;  %617 = vmatprep.subr.bf16.mxu1 %v661_v7  ;;  %v677_v16 = vld [vmem:[%s205_s4 + $0x4] ss:$8 sps:$4 sm:$0xff]   ;;  %v680_v17 = vld [vmem:[%s205_s4 + $0x14] ss:$8 sps:$4 sm:$0xff]   ;;  %v675_v23 = vld [vmem:[%s205_s4] ss:$8 sps:$4 sm:$0xff]  }
  0x14   : > { %v671_v19 = vld [vmem:[%s762_s27 + $0x48] sm:$0xff]   ;;  %431 = vmatprep.mubr.bf16.mxu0 %v677_v16  ;;  %439 = vmatprep.mubr.bf16.mxu1 %v680_v17  ;;  %v673_v21 = vld [vmem:[%s762_s27 + $0x40] sm:$0xff]   ;;  %v678_v24 = vld [vmem:[%s205_s4 + $0x10] ss:$8 sps:$4 sm:$0xff]  }
  0x15   : > { %591 = vmatpush3.bf16.msra.mxu0 %v662_v8  ;;  %625 = vmatpush3.bf16.msra.mxu1 %v662_v8  ;;  %v672_v20 = vld [vmem:[%s762_s27 + $0x8] sm:$0xff]   ;;  %v674_v22 = vld [vmem:[%s762_s27] sm:$0xff]  }
  0x16   : > { %592 = vmatprep.subr.bf16.mxu0 %v663_v9  ;;  %618 = vmatprep.subr.bf16.mxu1 %v663_v9 }
  0x19   : > { %593 = vmatpush3.bf16.msra.mxu0 %v664_v10  ;;  %626 = vmatpush3.bf16.msra.mxu1 %v664_v10 }
  0x1a   : > { %594 = vmatprep.subr.bf16.mxu0 %v665_v11  ;;  %619 = vmatprep.subr.bf16.mxu1 %v665_v11 }
  0x1d   : > { %595 = vmatpush3.bf16.msra.mxu0 %v666_v12  ;;  %627 = vmatpush3.bf16.msra.mxu1 %v666_v12 }
  0x1e   : > { %596 = vmatprep.subr.bf16.mxu0 %v667_v13  ;;  %620 = vmatprep.subr.bf16.mxu1 %v667_v13 }
  0x21   : > { %597 = vmatpush3.bf16.msra.mxu0 %v668_v14  ;;  %628 = vmatpush3.bf16.msra.mxu1 %v668_v14 }
  0x22   : > { %598 = vmatprep.subr.bf16.mxu0 %v669_v15  ;;  %621 = vmatprep.subr.bf16.mxu1 %v669_v15 }
  0x25   : > { %599 = vmatpush3.bf16.msra.mxu0 %v670_v18  ;;  %629 = vmatpush3.bf16.msra.mxu1 %v670_v18 }
  0x26   : > { %600 = vmatprep.subr.bf16.mxu0 %v671_v19  ;;  %622 = vmatprep.subr.bf16.mxu1 %v671_v19 }
  0x29   : > { %601 = vmatpush3.bf16.msra.mxu0 %v672_v20  ;;  %630 = vmatpush3.bf16.msra.mxu1 %v672_v20 }
  0x2a   : > { %602 = vmatprep.subr.bf16.mxu0 %v673_v21  ;;  %623 = vmatprep.subr.bf16.mxu1 %v673_v21 }
  0x2d   : > { %603 = vmatpush3.bf16.msra.mxu0 %v674_v22  ;;  %631 = vmatpush3.bf16.msra.mxu1 %v674_v22 }
  0x30   : > { %432 = vmatmul.mubr.bf16.vlgmr.msra.gmra.mxu0 %v675_v23  ;;  %440 = vmatmul.mubr.bf16.vlgmr.msra.gmra.mxu1 %v678_v24 }
  0x89   : > { %v276_v27 = vpop.permute.xlu1 %275  ;;  %v266_v28 = vpop.permute.xlu0 %265 }
  0x8d   : > { %v281_v43 = vpop.permute.xlu1 %280  ;;  %v271_v44 = vpop.permute.xlu0 %270 }
  0xf0   : > { %v604_v25 = vpop.f32.mrf.mxu0  ;;  %v610_v26 = vpop.f32.mrf.mxu1 }
  0xf2   : > { %v605_v29 = vpop.f32.mrf.mxu0  ;;  %v611_v30 = vpop.f32.mrf.mxu1 }
  0xf3   : > { %v606_v31 = vadd.f32 %v605_v29, %v604_v25  ;;  %v612_v32 = vadd.f32 %v611_v30, %v610_v26 }
  0xf4   : > { %v607_v33 = vpop.f32.mrf.mxu0  ;;  %v613_v34 = vpop.f32.mrf.mxu1 }
  0xf5   : > { %v434_v35 = vadd.f32 %v606_v31, %v266_v28  ;;  %v442_v36 = vadd.f32 %v612_v32, %v276_v27 }
  0xf6   : > { %v608_v37 = vpop.f32.mrf.mxu0  ;;  %v614_v38 = vpop.f32.mrf.mxu1 }
  0xf7   : > { %v448_v39 = vmax.f32 %v434_v35, 0.0  ;;  %v450_v40 = vmax.f32 %v442_v36, 0.0  ;;  %v609_v41 = vadd.f32 %v608_v37, %v607_v33  ;;  %v615_v42 = vadd.f32 %v614_v38, %v613_v34 }
  0xf9   : > { %453 = vst.msk [vmem:[%s221_s7] sm:$0xff] %vm452_vm0, %v448_v39  ;;  %455 = vst.msk [vmem:[%s221_s7 + $0x10] sm:$0xff] %vm452_vm0, %v450_v40  ;;  %v437_v45 = vadd.f32 %v609_v41, %v271_v44  ;;  %v445_v46 = vadd.f32 %v615_v42, %v281_v43 }
  0xfb   : > { %v449_v47 = vmax.f32 %v437_v45, 0.0  ;;  %v451_v48 = vmax.f32 %v445_v46, 0.0 }
  0xfd   : > { %454 = vst.msk [vmem:[%s221_s7 + $0x8] sm:$0xff] %vm452_vm0, %v449_v47  ;;  %456 = vst.msk [vmem:[%s221_s7 + $0x18] sm:$0xff] %vm452_vm0, %v451_v48 }
  0xfe PF: > { %s13_s14 = sadd.s32 1, %s703_s14   ;;  %s808_s12 = smov %s699_s13 }
  0xff   : > { %p10_p5 = scmp.ge.s32.totalorder %s13_s14, 6   ;;  %s809_s13 = smov %s811_s15 }
 0x101   :  { %12 = sbr.rel (!%p10_p5) target bundleno = 2 (0x2), region = 65 }

// kernel: dcgan_g_forward.7
= control target key start
LH: loop header
LB: loop body
LE: loop exit
PB: predicated region body
PF: predicated region fallthrough
CT: control target
= control target key end

     0   :  { %s585_s12 = smov 0   ;;  %s587_s13 = smov 0   ;;  %s632_s0 = inlined_call_operand.vmem [shape: bf16[4,16,128], index: 0, kind: input, shape index: {}]   ;;  %s633_s1 = inlined_call_operand.vmem [shape: bf16[4,128,128], index: 1, kind: input, shape index: {}]   ;;  %s634_s2 = inlined_call_operand.vmem [shape: f32[1,16,1], index: 2, kind: input, shape index: {}]   ;;  %s635_s3 = inlined_call_operand.vmem [shape: f32[4,16,128], index: 3, kind: output, shape index: {}]  }
   0x1   :  { %s589_s14 = smov 0  }
   0x2 LB: > { %s25_s15 = sadd.s32 1, %s556_s13  ;;  %p451_p0 = scmp.ge.s32.totalorder %s560_s14, 1  ;;  %s560_s14 = sphi %s589_s14, %s13_s14   ;;  %s556_s13 = sphi %s587_s13, %s637_s13   ;;  %s552_s12 = sphi %s585_s12, %s636_s12  }
   0x3   : > { %p27_p1 = scmp.ge.s32.totalorder %s25_s15, 4  ;;  %p166_p2 = scmp.lt.s32.totalorder %s560_s14, 5 }
   0x5   : > { %s639_s15 = smov (%p27_p1, %s25_s15), 0  ;;  %p167_p3 = pnand %p451_p0, %p166_p2 }
   0x6   : > { %p201_p4 = scmp.lt.s32.totalorder (!%p167_p3), %s552_s12, 3 }
   0x7   : > { %170 = sbr.rel (%p167_p3) target bundleno = 249 (0xf9), region = 32 }
   0xc   : > { %v241_v0 = vld [vmem:[%s634_s2] sm:$0xff]  ;;  %v562_v1 = vmov 0.0   ;;  %vm563_vm0 = vmmov 0   ;;  %s641_s12 = smov (!%p201_p4, %s552_s12), 3  ;;  %v564_v2 = vmov 0   ;;  %v242_v3 = vld [vmem:[%s634_s2 + $0x8] sm:$0xff] }
   0xd   : > { %481 = vmatprep.subr.bf16.mxu0 %v562_v1  ;;  %497 = vmatprep.mubr.msk.bf16.mxu0 %vm563_vm0, %v562_v1  ;;  %s470_s18 = sshll.u32 %s641_s12, 6  ;;  %s469_s24 = sshll.u32 %s641_s12, 3 }
   0xe   : > { %528 = vset.pattern.permute.xlu0 %v564_v2  ;;  %s213_s23 = scalar_lea.vmem %s633_s1, %s470_s18  ;;  %s205_s27 = scalar_lea.vmem %s632_s0, %s469_s24 }
   0xf   : > { %245 = vperm.xlu0 %528, %v241_v0   ;;  %v529_v4 = vld [vmem:[%s213_s23 + $0x38] sm:$0xff]   ;;  %v530_v5 = vld [vmem:[%s213_s23 + $0x30] sm:$0xff]   ;;  %v531_v6 = vld [vmem:[%s213_s23 + $0x28] sm:$0xff]   ;;  %s471_s28 = sshll.u32 %s641_s12, 4 }
  0x10   : > { %482 = vmatpush3.bf16.msra.mxu0 %v529_v4  ;;  %v532_v7 = vld [vmem:[%s213_s23 + $0x20] sm:$0xff]   ;;  %v533_v8 = vld [vmem:[%s213_s23 + $0x18] sm:$0xff]   ;;  %v534_v9 = vld [vmem:[%s213_s23 + $0x10] sm:$0xff]   ;;  %s221_s4 = scalar_lea.vmem %s635_s3, %s471_s28 }
  0x11   : > { %483 = vmatprep.subr.bf16.mxu0 %v562_v1  ;;  %v535_v10 = vld [vmem:[%s213_s23 + $0x8] sm:$0xff]   ;;  %v536_v11 = vld [vmem:[%s213_s23] sm:$0xff]  }
  0x12   : > { %v537_v12 = vld [vmem:[%s205_s27] sm:$0xff]  }
  0x13   : > { %250 = vperm.xlu0 %528, %v242_v3  }
  0x14   : > { %484 = vmatpush3.bf16.msra.mxu0 %v530_v5 }
  0x15   : > { %485 = vmatprep.subr.bf16.mxu0 %v562_v1 }
  0x18   : > { %486 = vmatpush3.bf16.msra.mxu0 %v531_v6 }
  0x19   : > { %487 = vmatprep.subr.bf16.mxu0 %v562_v1 }
  0x1c   : > { %488 = vmatpush3.bf16.msra.mxu0 %v532_v7 }
  0x1d   : > { %489 = vmatprep.subr.bf16.mxu0 %v562_v1 }
  0x20   : > { %490 = vmatpush3.bf16.msra.mxu0 %v533_v8 }
  0x21   : > { %491 = vmatprep.subr.bf16.mxu0 %v562_v1 }
  0x24   : > { %492 = vmatpush3.bf16.msra.mxu0 %v534_v9 }
  0x25   : > { %493 = vmatprep.subr.bf16.mxu0 %v562_v1 }
  0x28   : > { %494 = vmatpush3.bf16.msra.mxu0 %v535_v10 }
  0x29   : > { %495 = vmatprep.subr.bf16.mxu0 %v562_v1 }
  0x2c   : > { %496 = vmatpush3.bf16.msra.mxu0 %v536_v11 }
  0x2f   : > { %498 = vmatmul.mubr.bf16.vlgmr.msra.gmra.mxu0 %v537_v12 }
  0x8a   : > { %v246_v13 = vpop.permute.xlu0 %245 }
  0x8e   : > { %v251_v18 = vpop.permute.xlu0 %250 }
  0xef   : > { %v341_v14 = vpop.f32.mrf.mxu0 }
  0xf0   : > { %v342_v15 = vadd.f32 %v341_v14, %v246_v13 }
  0xf1   : > { %v499_v16 = vpop.f32.mrf.mxu0 }
  0xf2   : > { %v348_v17 = vmax.f32 %v342_v15, 0.0 }
  0xf3   : > { %v344_v19 = vpop.f32.mrf.mxu0 }
  0xf4   : > { %350 = vst [vmem:[%s221_s4] sm:$0xff] %v348_v17  ;;  %v345_v20 = vadd.f32 %v344_v19, %v251_v18 }
  0xf5   : > { %v500_v21 = vpop.f32.mrf.mxu0 }
  0xf6   : > { %v349_v22 = vmax.f32 %v345_v20, 0.0 }
  0xf8   : > { %351 = vst [vmem:[%s221_s4 + $0x8] sm:$0xff] %v349_v22 }
  0xf9 PF: > { %s13_s14 = sadd.s32 1, %s560_s14   ;;  %s636_s12 = smov %s556_s13 }
  0xfa   : > { %p10_p5 = scmp.ge.s32.totalorder %s13_s14, 6   ;;  %s637_s13 = smov %s639_s15 }
  0xfc   :  { %12 = sbr.rel (!%p10_p5) target bundleno = 2 (0x2), region = 65 }

// kernel: dcgan_g_forward.8
= control target key start
LH: loop header
LB: loop body
LE: loop exit
PB: predicated region body
PF: predicated region fallthrough
CT: control target
= control target key end

     0   :  { %s651_s12 = smov 0   ;;  %s653_s13 = smov 0   ;;  %s695_s0 = inlined_call_operand.vmem [shape: bf16[4,8,64], index: 0, kind: input, shape index: {}]   ;;  %s696_s1 = inlined_call_operand.vmem [shape: bf16[4,64,512], index: 1, kind: input, shape index: {}]   ;;  %s697_s2 = inlined_call_operand.vmem [shape: f32[1,8,1], index: 2, kind: input, shape index: {}]   ;;  %s698_s3 = inlined_call_operand.vmem [shape: f32[4,8,512], index: 3, kind: output, shape index: {}]  }
   0x1   :  { %s655_s14 = smov 0  }
   0x2 LB: > { %s25_s15 = sadd.s32 1, %s624_s13  ;;  %p528_p0 = scmp.ge.s32.totalorder %s628_s14, 1  ;;  %s628_s14 = sphi %s655_s14, %s13_s14   ;;  %s624_s13 = sphi %s653_s13, %s700_s13   ;;  %s620_s12 = sphi %s651_s12, %s699_s12  }
   0x3   : > { %p27_p1 = scmp.ge.s32.totalorder %s25_s15, 4  ;;  %p167_p2 = scmp.lt.s32.totalorder %s628_s14, 5 }
   0x5   : > { %s702_s15 = smov (%p27_p1, %s25_s15), 0  ;;  %p168_p3 = pnand %p528_p0, %p167_p2 }
   0x6   : > { %p203_p4 = scmp.lt.s32.totalorder (!%p168_p3), %s620_s12, 3 }
   0x7   : > { %171 = sbr.rel (%p168_p3) target bundleno = 232 (0xe8), region = 32 }
   0xc   : > { %v245_v0 = vld [vmem:[%s697_s2] sm:$0xff]  ;;  %v630_v1 = vmov 0   ;;  %s704_s12 = smov (!%p203_p4, %s620_s12), 3  ;;  %vm331_vm0 = vcmask 523264  }
   0xd   : > { %367 = vmatprep.mubr.bf16.mxu0 %v630_v1  ;;  %408 = vmatprep.mubr.bf16.mxu1 %v630_v1  ;;  %s554_s18 = sshll.u32 %s704_s12, 7  ;;  %s529_s22 = sshll.u32 %s704_s12, 2 }
   0xe   : > { %581 = vset.pattern.permute.xlu0 %v630_v1  ;;  %s215_s21 = scalar_lea.vmem %s696_s1, %s554_s18  ;;  %s206_s25 = scalar_lea.vmem %s695_s0, %s529_s22 }
   0xf   : > { %248 = vperm.xlu0 %581, %v245_v0   ;;  %v582_v2 = vld [vmem:[%s215_s21 + $0x64] ss:$16 sps:$4 sm:$0xff]   ;;  %v584_v3 = vld [vmem:[%s215_s21 + $0x6c] ss:$16 sps:$4 sm:$0xff]   ;;  %v586_v4 = vld [vmem:[%s215_s21 + $0x60] ss:$16 sps:$4 sm:$0xff]  }
  0x10   : > { %343 = vmatprep.subr.bf16.mxu0 %v582_v2  ;;  %v587_v5 = vld [vmem:[%s215_s21 + $0x68] ss:$16 sps:$4 sm:$0xff]   ;;  %384 = vmatprep.subr.bf16.mxu1 %v584_v3  ;;  %v588_v6 = vld [vmem:[%s215_s21 + $0x44] ss:$16 sps:$4 sm:$0xff]   ;;  %v590_v7 = vld [vmem:[%s215_s21 + $0x4c] ss:$16 sps:$4 sm:$0xff]  }
  0x11   : > { %344 = vmatpush1.bf16.msra.mxu0 %v586_v4  ;;  %385 = vmatpush1.bf16.msra.mxu1 %v587_v5  ;;  %v592_v8 = vld [vmem:[%s215_s21 + $0x40] ss:$16 sps:$4 sm:$0xff]   ;;  %v593_v9 = vld [vmem:[%s215_s21 + $0x48] ss:$16 sps:$4 sm:$0xff]   ;;  %v594_v10 = vld [vmem:[%s215_s21 + $0x24] ss:$16 sps:$4 sm:$0xff]  }
  0x12   : > { %345 = vmatprep.subr.bf16.mxu0 %v588_v6  ;;  %386 = vmatprep.subr.bf16.mxu1 %v590_v7  ;;  %v596_v11 = vld [vmem:[%s215_s21 + $0x2c] ss:$16 sps:$4 sm:$0xff]   ;;  %v598_v12 = vld [vmem:[%s215_s21 + $0x20] ss:$16 sps:$4 sm:$0xff]   ;;  %v599_v13 = vld [vmem:[%s215_s21 + $0x28] ss:$16 sps:$4 sm:$0xff]  }
  0x13   : > { %v600_v14 = vld [vmem:[%s215_s21 + $0x4] ss:$16 sps:$4 sm:$0xff]   ;;  %v602_v15 = vld [vmem:[%s215_s21 + $0xc] ss:$16 sps:$4 sm:$0xff]   ;;  %v604_v16 = vld [vmem:[%s215_s21] ss:$16 sps:$4 sm:$0xff]  }
  0x14   : > { %v605_v17 = vld [vmem:[%s215_s21 + $0x8] ss:$16 sps:$4 sm:$0xff]   ;;  %v228_v18 = vld [vmem:[%s206_s25] sm:$0xf]  ;;  %s555_s26 = sshll.u32 %s704_s12, 5 }
  0x15   : > { %346 = vmatpush1.bf16.msra.mxu0 %v592_v8  ;;  %387 = vmatpush1.bf16.msra.mxu1 %v593_v9  ;;  %s225_s29 = scalar_lea.vmem %s698_s3, %s555_s26 }
  0x16   : > { %347 = vmatprep.subr.bf16.mxu0 %v594_v10  ;;  %388 = vmatprep.subr.bf16.mxu1 %v596_v11 }
  0x19   : > { %348 = vmatpush1.bf16.msra.mxu0 %v598_v12  ;;  %389 = vmatpush1.bf16.msra.mxu1 %v599_v13 }
  0x1a   : > { %349 = vmatprep.subr.bf16.mxu0 %v600_v14  ;;  %390 = vmatprep.subr.bf16.mxu1 %v602_v15 }
  0x1d   : > { %350 = vmatpush1.bf16.msra.mxu0 %v604_v16  ;;  %391 = vmatpush1.bf16.msra.mxu1 %v605_v17 }
  0x20   : > { %550 = vmatmul.mubr.msk.bf16.vlgmr.msra.gmra.mxu0 %vm331_vm0, %v228_v18  ;;  %551 = vmatmul.mubr.msk.bf16.vlgmr.msra.gmra.mxu1 %vm331_vm0, %v228_v18 }
  0x8a   : > { %v249_v19 = vpop.permute.xlu0 %248 }
  0xe0   : > { %v369_v20 = vpop.f32.mrf.mxu0  ;;  %v410_v21 = vpop.f32.mrf.mxu1 }
  0xe1   : > { %v370_v22 = vadd.f32 %v369_v20, %v249_v19  ;;  %v411_v23 = vadd.f32 %v410_v21, %v249_v19 }
  0xe2   : > { %v371_v24 = vpop.f32.mrf.mxu0  ;;  %v412_v25 = vpop.f32.mrf.mxu1 }
  0xe3   : > { %v417_v26 = vmax.f32 %v370_v22, 0.0  ;;  %v419_v27 = vmax.f32 %v411_v23, 0.0  ;;  %v372_v28 = vadd.f32 %v371_v24, %v249_v19  ;;  %v413_v29 = vadd.f32 %v412_v25, %v249_v19 }
  0xe4   : > { %v373_v30 = vpop.f32.mrf.mxu0  ;;  %v414_v31 = vpop.f32.mrf.mxu1 }
  0xe5   : > { %421 = vst [vmem:[%s225_s29] sm:$0xff] %v417_v26  ;;  %423 = vst [vmem:[%s225_s29 + $0x10] sm:$0xff] %v419_v27  ;;  %v418_v32 = vmax.f32 %v372_v28, 0.0  ;;  %v420_v33 = vmax.f32 %v413_v29, 0.0 }
  0xe6   : > { %v374_v34 = vpop.f32.mrf.mxu0  ;;  %v415_v35 = vpop.f32.mrf.mxu1 }
  0xe7   : > { %422 = vst [vmem:[%s225_s29 + $0x8] sm:$0xff] %v418_v32  ;;  %424 = vst [vmem:[%s225_s29 + $0x18] sm:$0xff] %v420_v33 }
  0xe8 PF: > { %s13_s14 = sadd.s32 1, %s628_s14   ;;  %s699_s12 = smov %s624_s13 }
  0xe9   : > { %p10_p5 = scmp.ge.s32.totalorder %s13_s14, 6   ;;  %s700_s13 = smov %s702_s15 }
  0xeb   :  { %12 = sbr.rel (!%p10_p5) target bundleno = 2 (0x2), region = 65 }

// kernel: dcgan_g_forward.9
= control target key start
LH: loop header
LB: loop body
LE: loop exit
PB: predicated region body
PF: predicated region fallthrough
CT: control target
= control target key end

     0   :  { %s1071_s12 = smov 0   ;;  %s1073_s13 = smov 0   ;;  %s1204_s0 = inlined_call_operand.vmem [shape: bf16[4,3,32], index: 0, kind: input, shape index: {}]   ;;  %s1205_s1 = inlined_call_operand.vmem [shape: bf16[4,32,2048], index: 1, kind: input, shape index: {}]   ;;  %s1206_s2 = inlined_call_operand.vmem [shape: f32[1,3,1], index: 2, kind: input, shape index: {}]   ;;  %s1207_s3 = inlined_call_operand.vmem [shape: f32[4,3,2048], index: 3, kind: output, shape index: {}]  }
   0x1   :  { %s1075_s14 = smov 0  }
   0x2 LB: > { %s25_s15 = sadd.s32 1, %s1044_s13  ;;  %p918_p0 = scmp.ge.s32.totalorder %s1048_s14, 1  ;;  %s1048_s14 = sphi %s1075_s14, %s13_s14   ;;  %s1044_s13 = sphi %s1073_s13, %s1209_s13   ;;  %s1040_s12 = sphi %s1071_s12, %s1208_s12  }
   0x3   : > { %p27_p1 = scmp.ge.s32.totalorder %s25_s15, 4  ;;  %p167_p2 = scmp.lt.s32.totalorder %s1048_s14, 5 }
   0x5   : > { %s1211_s15 = smov (%p27_p1, %s25_s15), 0  ;;  %p168_p3 = pnand %p918_p0, %p167_p2 }
   0x6   : > { %p203_p4 = scmp.lt.s32.totalorder (!%p168_p3), %s1040_s12, 3 }
   0x7   : > { %171 = sbr.rel (%p168_p3) target bundleno = 266 (0x10a), region = 32 }
   0xc   : > { %v261_v0 = vld [vmem:[%s1206_s2] sm:$0x7]  ;;  %v1050_v1 = vmov 0   ;;  %s1213_s12 = smov (!%p203_p4, %s1040_s12), 3  ;;  %vm427_vm0 = vcmask 261120  }
   0xd   : > { %463 = vmatprep.mubr.bf16.mxu0 %v1050_v1  ;;  %504 = vmatprep.mubr.bf16.mxu1 %v1050_v1  ;;  %s966_s18 = sshll.u32 %s1213_s12, 8  ;;  %s919_s22 = sshll.u32 %s1213_s12, 1 }
   0xe   : > { %993 = vset.pattern.permute.xlu0 %v1050_v1  ;;  %s1101_s21 = scalar_lea.vmem %s1205_s1, %s966_s18  ;;  %s206_s25 = scalar_lea.vmem %s1204_s0, %s919_s22 }
   0xf   : > { %264 = vperm.xlu0 %993, %v261_v0   ;;  %v245_v2 = vld [vmem:[%s1101_s21 + $0x80] sm:$0xff]  ;;  %v246_v4 = vld [vmem:[%s1101_s21 + $0x88] sm:$0xff]  ;;  %v247_v16 = vld [vmem:[%s1101_s21 + $0x90] sm:$0xff]  ;;  %s967_s26 = sshll.u32 %s1213_s12, 6 }
  0x10   : > { %v253_v3 = vld [vmem:[%s1101_s21 + $0xc0] sm:$0xff]  ;;  %v254_v6 = vld [vmem:[%s1101_s21 + $0xc8] sm:$0xff]  ;;  %v255_v17 = vld [vmem:[%s1101_s21 + $0xd0] sm:$0xff]  ;;  %s1178_s29 = scalar_lea.vmem %s1207_s3, %s967_s26 }
  0x11   : > { %v941_v5 = vcombine.high %v245_v2, %v253_v3  ;;  %v940_v7 = vcombine.low %v245_v2, %v253_v3  ;;  %v229_v8 = vld [vmem:[%s1101_s21] sm:$0xff]  ;;  %v943_v10 = vcombine.high %v246_v4, %v254_v6  ;;  %v942_v11 = vcombine.low %v246_v4, %v254_v6  ;;  %v230_v13 = vld [vmem:[%s1101_s21 + $0x8] sm:$0xff]  ;;  %v248_v18 = vld [vmem:[%s1101_s21 + $0x98] sm:$0xff] }
  0x12   : > { %v237_v9 = vld [vmem:[%s1101_s21 + $0x40] sm:$0xff]  ;;  %v238_v14 = vld [vmem:[%s1101_s21 + $0x48] sm:$0xff]  ;;  %v256_v20 = vld [vmem:[%s1101_s21 + $0xd8] sm:$0xff]  ;;  %v945_v22 = vcombine.high %v247_v16, %v255_v17  ;;  %v944_v29 = vcombine.low %v247_v16, %v255_v17 }
  0x13   : > { %v925_v12 = vcombine.high %v229_v8, %v237_v9  ;;  %443 = vmatprep.subr.bf16.mxu0 %v941_v5  ;;  %v927_v15 = vcombine.high %v230_v13, %v238_v14  ;;  %484 = vmatprep.subr.bf16.mxu1 %v943_v10  ;;  %v924_v19 = vcombine.low %v229_v8, %v237_v9  ;;  %v231_v24 = vld [vmem:[%s1101_s21 + $0x10] sm:$0xff]  ;;  %v232_v26 = vld [vmem:[%s1101_s21 + $0x18] sm:$0xff]  ;;  %v1123_v28 = vld [vmem:[%s206_s25] sm:$0x3] }
  0x14   : > { %444 = vmatpush1.bf16.msra.mxu0 %v940_v7  ;;  %485 = vmatpush1.bf16.msra.mxu1 %v942_v11  ;;  %v926_v21 = vcombine.low %v230_v13, %v238_v14  ;;  %v947_v23 = vcombine.high %v248_v18, %v256_v20  ;;  %v239_v25 = vld [vmem:[%s1101_s21 + $0x50] sm:$0xff]  ;;  %v240_v27 = vld [vmem:[%s1101_s21 + $0x58] sm:$0xff]  ;;  %v946_v30 = vcombine.low %v248_v18, %v256_v20  ;;  %v249_v33 = vld [vmem:[%s1101_s21 + $0xa0] sm:$0xff] }
  0x15   : > { %445 = vmatprep.subr.bf16.mxu0 %v925_v12  ;;  %486 = vmatprep.subr.bf16.mxu1 %v927_v15  ;;  %v929_v31 = vcombine.high %v231_v24, %v239_v25  ;;  %v931_v32 = vcombine.high %v232_v26, %v240_v27  ;;  %v257_v34 = vld [vmem:[%s1101_s21 + $0xe0] sm:$0xff]  ;;  %v250_v35 = vld [vmem:[%s1101_s21 + $0xa8] sm:$0xff]  ;;  %v928_v37 = vcombine.low %v231_v24, %v239_v25  ;;  %v251_v49 = vld [vmem:[%s1101_s21 + $0xb0] sm:$0xff] }
  0x16   : > { %v258_v36 = vld [vmem:[%s1101_s21 + $0xe8] sm:$0xff]  ;;  %v930_v38 = vcombine.low %v232_v26, %v240_v27  ;;  %v949_v39 = vcombine.high %v249_v33, %v257_v34  ;;  %v233_v41 = vld [vmem:[%s1101_s21 + $0x20] sm:$0xff]  ;;  %v948_v45 = vcombine.low %v249_v33, %v257_v34  ;;  %v259_v50 = vld [vmem:[%s1101_s21 + $0xf0] sm:$0xff] }
  0x17   : > { %v951_v40 = vcombine.high %v250_v35, %v258_v36  ;;  %v241_v42 = vld [vmem:[%s1101_s21 + $0x60] sm:$0xff]  ;;  %v234_v43 = vld [vmem:[%s1101_s21 + $0x28] sm:$0xff]  ;;  %v950_v46 = vcombine.low %v250_v35, %v258_v36  ;;  %v252_v51 = vld [vmem:[%s1101_s21 + $0xb8] sm:$0xff]  ;;  %v953_v55 = vcombine.high %v251_v49, %v259_v50  ;;  %v952_v61 = vcombine.low %v251_v49, %v259_v50 }
  0x18   : > { %446 = vmatpush1.bf16.msra.mxu0 %v924_v19  ;;  %487 = vmatpush1.bf16.msra.mxu1 %v926_v21  ;;  %v242_v44 = vld [vmem:[%s1101_s21 + $0x68] sm:$0xff]  ;;  %v933_v47 = vcombine.high %v233_v41, %v241_v42  ;;  %v260_v52 = vld [vmem:[%s1101_s21 + $0xf8] sm:$0xff]  ;;  %v932_v53 = vcombine.low %v233_v41, %v241_v42  ;;  %v235_v57 = vld [vmem:[%s1101_s21 + $0x30] sm:$0xff] }
  0x19   : > { %525 = vmatprep.subr.bf16.mxu0 %v945_v22  ;;  %566 = vmatprep.subr.bf16.mxu1 %v947_v23  ;;  %v935_v48 = vcombine.high %v234_v43, %v242_v44  ;;  %v934_v54 = vcombine.low %v234_v43, %v242_v44  ;;  %v955_v56 = vcombine.high %v252_v51, %v260_v52  ;;  %v243_v58 = vld [vmem:[%s1101_s21 + $0x70] sm:$0xff]  ;;  %v236_v59 = vld [vmem:[%s1101_s21 + $0x38] sm:$0xff] }
  0x1a   : > { %v244_v60 = vld [vmem:[%s1101_s21 + $0x78] sm:$0xff]  ;;  %v954_v62 = vcombine.low %v252_v51, %v260_v52  ;;  %v937_v63 = vcombine.high %v235_v57, %v243_v58  ;;  %v936_v2 = vcombine.low %v235_v57, %v243_v58 }
  0x1b   : > { %956 = vmatmul.mubr.msk.bf16.vlgmr.msra.gmra.mxu0 %vm427_vm0, %v1123_v28  ;;  %957 = vmatmul.mubr.msk.bf16.vlgmr.msra.gmra.mxu1 %vm427_vm0, %v1123_v28  ;;  %v939_v0 = vcombine.high %v236_v59, %v244_v60  ;;  %v938_v3 = vcombine.low %v236_v59, %v244_v60 }
  0x1c   : > { %526 = vmatpush1.bf16.msra.mxu0 %v944_v29  ;;  %567 = vmatpush1.bf16.msra.mxu1 %v946_v30 }
  0x1d   : > { %527 = vmatprep.subr.bf16.mxu0 %v929_v31  ;;  %568 = vmatprep.subr.bf16.mxu1 %v931_v32 }
  0x1e   : > { %545 = vmatprep.mubr.bf16.mxu0 %v1050_v1  ;;  %586 = vmatprep.mubr.bf16.mxu1 %v1050_v1 }
  0x20   : > { %528 = vmatpush1.bf16.msra.mxu0 %v928_v37  ;;  %569 = vmatpush1.bf16.msra.mxu1 %v930_v38 }
  0x21   : > { %607 = vmatprep.subr.bf16.mxu0 %v949_v39  ;;  %648 = vmatprep.subr.bf16.mxu1 %v951_v40 }
  0x23   : > { %958 = vmatmul.mubr.msk.bf16.vlgmr.msra.gmra.mxu0 %vm427_vm0, %v1123_v28  ;;  %959 = vmatmul.mubr.msk.bf16.vlgmr.msra.gmra.mxu1 %vm427_vm0, %v1123_v28 }
  0x24   : > { %608 = vmatpush1.bf16.msra.mxu0 %v948_v45  ;;  %649 = vmatpush1.bf16.msra.mxu1 %v950_v46 }
  0x25   : > { %609 = vmatprep.subr.bf16.mxu0 %v933_v47  ;;  %650 = vmatprep.subr.bf16.mxu1 %v935_v48 }
  0x26   : > { %627 = vmatprep.mubr.bf16.mxu0 %v1050_v1  ;;  %668 = vmatprep.mubr.bf16.mxu1 %v1050_v1 }
  0x28   : > { %610 = vmatpush1.bf16.msra.mxu0 %v932_v53  ;;  %651 = vmatpush1.bf16.msra.mxu1 %v934_v54 }
  0x29   : > { %689 = vmatprep.subr.bf16.mxu0 %v953_v55  ;;  %730 = vmatprep.subr.bf16.mxu1 %v955_v56 }
  0x2b   : > { %960 = vmatmul.mubr.msk.bf16.vlgmr.msra.gmra.mxu0 %vm427_vm0, %v1123_v28  ;;  %961 = vmatmul.mubr.msk.bf16.vlgmr.msra.gmra.mxu1 %vm427_vm0, %v1123_v28 }
  0x2c   : > { %690 = vmatpush1.bf16.msra.mxu0 %v952_v61  ;;  %731 = vmatpush1.bf16.msra.mxu1 %v954_v62 }
  0x2d   : > { %691 = vmatprep.subr.bf16.mxu0 %v937_v63  ;;  %732 = vmatprep.subr.bf16.mxu1 %v939_v0 }
  0x2e   : > { %709 = vmatprep.mubr.bf16.mxu0 %v1050_v1  ;;  %750 = vmatprep.mubr.bf16.mxu1 %v1050_v1 }
  0x30   : > { %692 = vmatpush1.bf16.msra.mxu0 %v936_v2  ;;  %733 = vmatpush1.bf16.msra.mxu1 %v938_v3 }
  0x33   : > { %962 = vmatmul.mubr.msk.bf16.vlgmr.msra.gmra.mxu0 %vm427_vm0, %v1123_v28  ;;  %963 = vmatmul.mubr.msk.bf16.vlgmr.msra.gmra.mxu1 %vm427_vm0, %v1123_v28 }
  0x8a   : > { %v1163_v4 = vpop.permute.xlu0 %264 }
  0xdb   : > { %v465_v5 = vpop.f32.mrf.mxu0  ;;  %v506_v6 = vpop.f32.mrf.mxu1 }
  0xdc   : > { %v466_v7 = vadd.f32 %v465_v5, %v1163_v4  ;;  %v507_v9 = vadd.f32 %v506_v6, %v1163_v4 }
  0xdd   : > { %v467_v8 = vpop.f32.mrf.mxu0  ;;  %v508_v1 = vpop.f32.mrf.mxu1 }
  0xde   : > { %v468_v10 = vadd.f32 %v467_v8, %v1163_v4  ;;  %994 = vtanh.f32 %v466_v7  ;;  %v509_v11 = vadd.f32 %v508_v1, %v1163_v4 }
  0xdf   : > { %996 = vtanh.f32 %v507_v9  ;;  %v469_v12 = vpop.f32.mrf.mxu0  ;;  %v510_v13 = vpop.f32.mrf.mxu1 }
  0xe0   : > { %998 = vtanh.f32 %v468_v10 }
  0xe1   : > { %1000 = vtanh.f32 %v509_v11  ;;  %v470_v14 = vpop.f32.mrf.mxu0  ;;  %v511_v15 = vpop.f32.mrf.mxu1 }
  0xe3   : > { %v547_v16 = vpop.f32.mrf.mxu0  ;;  %v588_v18 = vpop.f32.mrf.mxu1 }
  0xe4   : > { %v548_v17 = vadd.f32 %v547_v16, %v1163_v4  ;;  %v589_v19 = vadd.f32 %v588_v18, %v1163_v4 }
  0xe5   : > { %v549_v20 = vpop.f32.mrf.mxu0  ;;  %v590_v22 = vpop.f32.mrf.mxu1 }
  0xe6   : > { %1002 = vtanh.f32 %v548_v17  ;;  %v550_v21 = vadd.f32 %v549_v20, %v1163_v4  ;;  %v591_v23 = vadd.f32 %v590_v22, %v1163_v4 }
  0xe7   : > { %1004 = vtanh.f32 %v589_v19  ;;  %v551_v24 = vpop.f32.mrf.mxu0  ;;  %v592_v25 = vpop.f32.mrf.mxu1 }
  0xe8   : > { %1006 = vtanh.f32 %v550_v21 }
  0xe9   : > { %1008 = vtanh.f32 %v591_v23  ;;  %v552_v26 = vpop.f32.mrf.mxu0  ;;  %v593_v27 = vpop.f32.mrf.mxu1 }
  0xeb   : > { %v995_v28 = vpop.eup %994  ;;  %v629_v29 = vpop.f32.mrf.mxu0 }
  0xec   : > { %v997_v30 = vpop.eup %996  ;;  %v630_v31 = vadd.f32 %v629_v29, %v1163_v4  ;;  %v670_v32 = vpop.f32.mrf.mxu1 }
  0xed   : > { %v999_v33 = vpop.eup %998  ;;  %v671_v34 = vadd.f32 %v670_v32, %v1163_v4  ;;  %v631_v35 = vpop.f32.mrf.mxu0 }
  0xee   : > { %v1001_v36 = vpop.eup %1000  ;;  %v791_v37 = vcombine.low %v995_v28, %v999_v33  ;;  %1010 = vtanh.f32 %v630_v31  ;;  %v632_v38 = vadd.f32 %v631_v35, %v1163_v4  ;;  %v672_v39 = vpop.f32.mrf.mxu1 }
  0xef   : > { %v792_v40 = vcombine.low %v997_v30, %v1001_v36  ;;  %1012 = vtanh.f32 %v671_v34  ;;  %v673_v41 = vadd.f32 %v672_v39, %v1163_v4  ;;  %v633_v42 = vpop.f32.mrf.mxu0 }
  0xf0   : > { %807 = vst [vmem:[%s1178_s29] sm:$0x77] %v791_v37  ;;  %1014 = vtanh.f32 %v632_v38  ;;  %v674_v43 = vpop.f32.mrf.mxu1 }
  0xf1   : > { %808 = vst [vmem:[%s1178_s29 + $0x8] sm:$0x77] %v792_v40  ;;  %1016 = vtanh.f32 %v673_v41  ;;  %v634_v44 = vpop.f32.mrf.mxu0 }
  0xf2   : > { %v675_v45 = vpop.f32.mrf.mxu1 }
  0xf3   : > { %v1003_v46 = vpop.eup %1002  ;;  %v711_v47 = vpop.f32.mrf.mxu0 }
  0xf4   : > { %v1005_v48 = vpop.eup %1004  ;;  %v712_v49 = vadd.f32 %v711_v47, %v1163_v4  ;;  %v752_v50 = vpop.f32.mrf.mxu1 }
  0xf5   : > { %v1007_v51 = vpop.eup %1006  ;;  %v753_v52 = vadd.f32 %v752_v50, %v1163_v4  ;;  %v713_v53 = vpop.f32.mrf.mxu0 }
  0xf6   : > { %v1009_v54 = vpop.eup %1008  ;;  %v793_v55 = vcombine.low %v1003_v46, %v1007_v51  ;;  %1018 = vtanh.f32 %v712_v49  ;;  %v714_v56 = vadd.f32 %v713_v53, %v1163_v4  ;;  %v754_v57 = vpop.f32.mrf.mxu1 }
  0xf7   : > { %v794_v58 = vcombine.low %v1005_v48, %v1009_v54  ;;  %1020 = vtanh.f32 %v753_v52  ;;  %v755_v59 = vadd.f32 %v754_v57, %v1163_v4  ;;  %v715_v60 = vpop.f32.mrf.mxu0 }
  0xf8   : > { %809 = vst [vmem:[%s1178_s29 + $0x10] sm:$0x77] %v793_v55  ;;  %1022 = vtanh.f32 %v714_v56  ;;  %v756_v61 = vpop.f32.mrf.mxu1 }
  0xf9   : > { %810 = vst [vmem:[%s1178_s29 + $0x18] sm:$0x77] %v794_v58  ;;  %1024 = vtanh.f32 %v755_v59  ;;  %v716_v62 = vpop.f32.mrf.mxu0 }
  0xfa   : > { %v757_v63 = vpop.f32.mrf.mxu1 }
  0xfb   : > { %v1011_v0 = vpop.eup %1010 }
  0xfc   : > { %v1013_v2 = vpop.eup %1012 }
  0xfd   : > { %v1015_v3 = vpop.eup %1014 }
  0xfe   : > { %v1017_v5 = vpop.eup %1016  ;;  %v795_v6 = vcombine.low %v1011_v0, %v1015_v3 }
  0xff   : > { %v796_v7 = vcombine.low %v1013_v2, %v1017_v5 }
 0x100   : > { %811 = vst [vmem:[%s1178_s29 + $0x20] sm:$0x77] %v795_v6 }
 0x101   : > { %812 = vst [vmem:[%s1178_s29 + $0x28] sm:$0x77] %v796_v7 }
 0x103   : > { %v1019_v4 = vpop.eup %1018 }
 0x104   : > { %v1021_v8 = vpop.eup %1020 }
 0x105   : > { %v1023_v9 = vpop.eup %1022 }
 0x106   : > { %v1025_v10 = vpop.eup %1024  ;;  %v797_v1 = vcombine.low %v1019_v4, %v1023_v9 }
 0x107   : > { %v798_v11 = vcombine.low %v1021_v8, %v1025_v10 }
 0x108   : > { %813 = vst [vmem:[%s1178_s29 + $0x30] sm:$0x77] %v797_v1 }
 0x109   : > { %814 = vst [vmem:[%s1178_s29 + $0x38] sm:$0x77] %v798_v11 }
 0x10a PF: > { %s13_s14 = sadd.s32 1, %s1048_s14   ;;  %s1208_s12 = smov %s1044_s13 }
 0x10b   : > { %p10_p5 = scmp.ge.s32.totalorder %s13_s14, 6   ;;  %s1209_s13 = smov %s1211_s15 }
 0x10d   :  { %12 = sbr.rel (!%p10_p5) target bundleno = 2 (0x2), region = 65 }

</bundles_post_ra>
